<compile_context>
chip_gen: v5e
topology: v5e:2x2
jax: 0.10.0
libtpu: 0.0.40
codegen_flags: <defaults>
</compile_context>

<pallas_src>
import math
import jax
import jax.numpy as jnp
from jax.experimental import pallas as pl
from jax.experimental.pallas import tpu as pltpu


def transformer_block_kernel(
    x_ref, mask_ref,
    g1_ref, bln1_ref,                                   # LayerNorm 1
    wqk_ref, bqk_ref, wo_ref, bo_ref,                   # Attention (q/k fused)
    g2_ref, bln2_ref,                                   # LayerNorm 2
    w1_ref, bff1_ref, w2_ref, bff2_ref,                 # FeedForward
    out_ref, attnw_ref):
    eps = 1e-5
    B, S = mask_ref.shape
    D = x_ref.shape[-1]

    x = x_ref[...]                                      # (B*S, D) f32

    # ---- LayerNorm 1 (f32 vector math) ----
    mu = jnp.mean(x, axis=-1, keepdims=True)
    var = jnp.mean((x - mu) ** 2, axis=-1, keepdims=True)
    xn = (x - mu) * jax.lax.rsqrt(var + eps) * g1_ref[...] + bln1_ref[...]
    xn_bf = xn.astype(jnp.bfloat16)

    # ---- Fused Q/K projection: wqk = [wq/sqrt(d_k) | wk], bf16 in, f32 accumulate.
    # v deliberately reuses the k projection (reference uses k_linear for v).
    qk = jnp.dot(xn_bf, wqk_ref[...], preferred_element_type=jnp.float32) + bqk_ref[...]
    q = qk[:, :D].reshape(B, S, D).astype(jnp.bfloat16)         # already scaled by 1/sqrt(d_k)
    k_bf = qk[:, D:].reshape(B, S, D).astype(jnp.bfloat16)      # k == v

    # scores: contract on the last dims of q and k (no transpose materialized)
    scores = jnp.einsum('bqd,bkd->bqk', q, k_bf,
                        preferred_element_type=jnp.float32)     # (B, S, S)
    m = mask_ref[...]                                           # (B, S)
    scores = jnp.where(m[:, None, :] == 0.0, -1e9, scores)

    # stable softmax; divide moved to EUP reciprocal + VPU multiply
    scores = scores - jnp.max(scores, axis=-1, keepdims=True)
    e = jnp.exp(scores)
    inv_l = pl.reciprocal(jnp.sum(e, axis=-1, keepdims=True), approx=False)
    probs = e * inv_l                                           # (B, S, S) f32

    attn = jnp.einsum('bqk,bkd->bqd', probs.astype(jnp.bfloat16), k_bf,
                      preferred_element_type=jnp.float32)       # (B, S, D)
    attn_out = jnp.dot(attn.reshape(B * S, D).astype(jnp.bfloat16), wo_ref[...],
                       preferred_element_type=jnp.float32) + bo_ref[...]

    # residual 1 (dropout_1 is identity in eval mode)
    x2 = x + attn_out

    # ---- LayerNorm 2 ----
    mu2 = jnp.mean(x2, axis=-1, keepdims=True)
    var2 = jnp.mean((x2 - mu2) ** 2, axis=-1, keepdims=True)
    xn2 = (x2 - mu2) * jax.lax.rsqrt(var2 + eps) * g2_ref[...] + bln2_ref[...]

    # ---- FeedForward (dropout inside ff is identity) ----
    h = jnp.dot(xn2.astype(jnp.bfloat16), w1_ref[...],
                preferred_element_type=jnp.float32) + bff1_ref[...]
    h = jnp.maximum(h, 0.0)
    ff = jnp.dot(h.astype(jnp.bfloat16), w2_ref[...],
                 preferred_element_type=jnp.float32) + bff2_ref[...]

    # residual 2 (dropout_2 is identity)
    out_ref[...] = x2 + ff
    attnw_ref[...] = probs


def transformer_block(x, mask, params):
    B, S, D = x.shape
    inv_sqrt_dk = 1.0 / math.sqrt(D)

    # Host-side packing (once per weight set): fold 1/sqrt(d_k) into the q projection,
    # fuse [wq | wk] into one wider RHS, cast matmul weights to bf16 (biases stay f32,
    # added after the f32-accumulated matmul).
    wqk = jnp.concatenate([params["wq"] * inv_sqrt_dk, params["wk"]],
                          axis=1).astype(jnp.bfloat16)
    bqk = jnp.concatenate([params["bq"] * inv_sqrt_dk, params["bk"]], axis=1)
    kernel_params = [
        params["g1"], params["bln1"],
        wqk, bqk,
        params["wo"].astype(jnp.bfloat16), params["bo"],
        params["g2"], params["bln2"],
        params["w1"].astype(jnp.bfloat16), params["bff1"],
        params["w2"].astype(jnp.bfloat16), params["bff2"],
    ]

    x2d = x.reshape(B * S, D)   # fold batch*seq so the MXU/VPU see one dense slab

    def full_spec(arr):
        zeros = (0,) * arr.ndim
        return pl.BlockSpec(arr.shape, lambda i, z=zeros: z)

    # Single grid step: at these shapes everything (activations + weights) fits VMEM.
    # TODO(synk): for large S / d_ff, tile over query rows and d_ff with a VMEM
    # accumulator (and a parallel grid axis for v7x megacore) instead of one step.
    grid_spec = pltpu.PrefetchScalarGridSpec(
        num_scalar_prefetch=0,
        grid=(1,),
        in_specs=[full_spec(x2d), full_spec(mask)] + [full_spec(p) for p in kernel_params],
        out_specs=[
            pl.BlockSpec((B * S, D), lambda i: (0, 0)),
            pl.BlockSpec((B, S, S), lambda i: (0, 0, 0)),
        ],
    )

    out2d, attnw = pl.pallas_call(
        transformer_block_kernel,
        out_shape=(
            jax.ShapeDtypeStruct((B * S, D), jnp.float32),
            jax.ShapeDtypeStruct((B, S, S), jnp.float32),
        ),
        grid_spec=grid_spec,
        compiler_params=pltpu.CompilerParams(
            dimension_semantics=("arbitrary",)),
    )(x2d, mask, *kernel_params)

    return out2d.reshape(B, S, D), attnw


def reference_block(x, mask, params):
    """Pure-JAX f32 reference mirroring the PyTorch forward (eval mode)."""
    eps = 1e-5

    def ln(z, g, b):
        mu = jnp.mean(z, axis=-1, keepdims=True)
        var = jnp.mean((z - mu) ** 2, axis=-1, keepdims=True)
        return (z - mu) / jnp.sqrt(var + eps) * g + b

    D = x.shape[-1]
    xn = ln(x, params["g1"], params["bln1"])
    q = xn @ params["wq"] + params["bq"]
    k = xn @ params["wk"] + params["bk"]
    v = xn @ params["wk"] + params["bk"]          # same k_linear quirk as reference
    w = jnp.einsum("bqd,bkd->bqk", q, k) / math.sqrt(D)
    w = jnp.where(mask[:, None, :] == 0.0, -1e9, w)
    p = jax.nn.softmax(w, axis=-1)
    attn = jnp.einsum("bqk,bkd->bqd", p, v) @ params["wo"] + params["bo"]
    x2 = x + attn
    xn2 = ln(x2, params["g2"], params["bln2"])
    h = jnp.maximum(xn2 @ params["w1"] + params["bff1"], 0.0)
    ff = h @ params["w2"] + params["bff2"]
    return x2 + ff, p


if __name__ == "__main__":
    B, S, D, D_FF = 2, 8, 32, 1024  # d_ff=1024 matches FeedForward's default

    key = jax.random.PRNGKey(0)
    keys = jax.random.split(key, 16)

    def w(k, shape, scale=0.05):
        return (scale * jax.random.normal(k, shape)).astype(jnp.float32)

    params = {
        "g1":   jnp.ones((1, D), jnp.float32),
        "bln1": jnp.zeros((1, D), jnp.float32),
        "wq":   w(keys[0], (D, D)),  "bq":   w(keys[1], (1, D)),
        "wk":   w(keys[2], (D, D)),  "bk":   w(keys[3], (1, D)),
        "wo":   w(keys[4], (D, D)),  "bo":   w(keys[5], (1, D)),
        "g2":   jnp.ones((1, D), jnp.float32),
        "bln2": jnp.zeros((1, D), jnp.float32),
        "w1":   w(keys[6], (D, D_FF)), "bff1": w(keys[7], (1, D_FF)),
        "w2":   w(keys[8], (D_FF, D)), "bff2": w(keys[9], (1, D)),
    }
    # TODO(synk): v_linear exists in the PyTorch module but is never used in its
    # forward (v = k_linear(v)); it is intentionally omitted here.

    x = jax.random.normal(keys[10], (B, S, D), jnp.float32)
    mask = (jax.random.uniform(keys[11], (B, S)) > 0.25).astype(jnp.float32)
    mask = mask.at[:, 0].set(1.0)  # ensure at least one unmasked position per row

    out, attn_w = transformer_block(x, mask, params)
    out = jax.block_until_ready(out)
    attn_w = jax.block_until_ready(attn_w)

    ref_out, ref_w = reference_block(x, mask, params)
    # bf16 matmul inputs (f32 accumulation) vs f32 reference -> loosened tolerances
    assert jnp.allclose(out, ref_out, atol=3e-2, rtol=3e-2), "output mismatch"
    assert jnp.allclose(attn_w, ref_w, atol=1e-2, rtol=1e-2), "attn weights mismatch"

    print("KERNEL_OK")
</pallas_src>

<mosaic_0001>
module attributes {stable_mosaic.version = 11 : i64} {
  func.func @transformer_block_kernel(%arg0: i32, %arg1: memref<16x32xf32, #tpu.memory_space<vmem>>, %arg2: memref<2x8xf32, #tpu.memory_space<vmem>>, %arg3: memref<1x32xf32, #tpu.memory_space<vmem>>, %arg4: memref<1x32xf32, #tpu.memory_space<vmem>>, %arg5: memref<32x64xbf16, #tpu.memory_space<vmem>>, %arg6: memref<1x64xf32, #tpu.memory_space<vmem>>, %arg7: memref<32x32xbf16, #tpu.memory_space<vmem>>, %arg8: memref<1x32xf32, #tpu.memory_space<vmem>>, %arg9: memref<1x32xf32, #tpu.memory_space<vmem>>, %arg10: memref<1x32xf32, #tpu.memory_space<vmem>>, %arg11: memref<32x1024xbf16, #tpu.memory_space<vmem>>, %arg12: memref<1x1024xf32, #tpu.memory_space<vmem>>, %arg13: memref<1024x32xbf16, #tpu.memory_space<vmem>>, %arg14: memref<1x32xf32, #tpu.memory_space<vmem>>, %arg15: memref<16x32xf32, #tpu.memory_space<vmem>>, %arg16: memref<2x8x8xf32, #tpu.memory_space<vmem>>) attributes {dimension_semantics = [#tpu.dimension_semantics<arbitrary>], iteration_bounds = array<i64: 1>, scalar_prefetch = 0 : i64, scratch_operands = 0 : i64, tpu.core_type = #tpu.core_type<tc>, window_params = [{pipeline_mode = #tpu.pipeline_mode<synchronous>, transform_indices = @transform_0, window_bounds = array<i64: 16, 32>}, {pipeline_mode = #tpu.pipeline_mode<synchronous>, transform_indices = @transform_1, window_bounds = array<i64: 2, 8>}, {pipeline_mode = #tpu.pipeline_mode<synchronous>, transform_indices = @transform_2, window_bounds = array<i64: 1, 32>}, {pipeline_mode = #tpu.pipeline_mode<synchronous>, transform_indices = @transform_3, window_bounds = array<i64: 1, 32>}, {pipeline_mode = #tpu.pipeline_mode<synchronous>, transform_indices = @transform_4, window_bounds = array<i64: 32, 64>}, {pipeline_mode = #tpu.pipeline_mode<synchronous>, transform_indices = @transform_5, window_bounds = array<i64: 1, 64>}, {pipeline_mode = #tpu.pipeline_mode<synchronous>, transform_indices = @transform_6, window_bounds = array<i64: 32, 32>}, {pipeline_mode = #tpu.pipeline_mode<synchronous>, transform_indices = @transform_7, window_bounds = array<i64: 1, 32>}, {pipeline_mode = #tpu.pipeline_mode<synchronous>, transform_indices = @transform_8, window_bounds = array<i64: 1, 32>}, {pipeline_mode = #tpu.pipeline_mode<synchronous>, transform_indices = @transform_9, window_bounds = array<i64: 1, 32>}, {pipeline_mode = #tpu.pipeline_mode<synchronous>, transform_indices = @transform_10, window_bounds = array<i64: 32, 1024>}, {pipeline_mode = #tpu.pipeline_mode<synchronous>, transform_indices = @transform_11, window_bounds = array<i64: 1, 1024>}, {pipeline_mode = #tpu.pipeline_mode<synchronous>, transform_indices = @transform_12, window_bounds = array<i64: 1024, 32>}, {pipeline_mode = #tpu.pipeline_mode<synchronous>, transform_indices = @transform_13, window_bounds = array<i64: 1, 32>}, {pipeline_mode = #tpu.pipeline_mode<synchronous>, transform_indices = @transform_14, window_bounds = array<i64: 16, 32>}, {pipeline_mode = #tpu.pipeline_mode<synchronous>, transform_indices = @transform_15, window_bounds = array<i64: 2, 8, 8>}]} {
    %c0 = arith.constant 0 : index
    %c0_0 = arith.constant 0 : index
    %0 = vector.load %arg1[%c0, %c0_0] : memref<16x32xf32, #tpu.memory_space<vmem>>, vector<16x32xf32>
    %cst = arith.constant dense<0.000000e+00> : vector<16xf32>
    %1 = vector.multi_reduction <add>, %0, %cst [1] : vector<16x32xf32> to vector<16xf32>
    %2 = vector.shape_cast %1 : vector<16xf32> to vector<16x1xf32>
    %cst_1 = arith.constant 3.200000e+01 : f32
    %3 = vector.broadcast %cst_1 : f32 to vector<16x1xf32>
    %4 = arith.divf %2, %3 : vector<16x1xf32>
    %5 = vector.broadcast %4 : vector<16x1xf32> to vector<16x32xf32>
    %6 = arith.subf %0, %5 : vector<16x32xf32>
    %7 = arith.mulf %6, %6 : vector<16x32xf32>
    %cst_2 = arith.constant dense<0.000000e+00> : vector<16xf32>
    %8 = vector.multi_reduction <add>, %7, %cst_2 [1] : vector<16x32xf32> to vector<16xf32>
    %9 = vector.shape_cast %8 : vector<16xf32> to vector<16x1xf32>
    %cst_3 = arith.constant 3.200000e+01 : f32
    %10 = vector.broadcast %cst_3 : f32 to vector<16x1xf32>
    %11 = arith.divf %9, %10 : vector<16x1xf32>
    %12 = vector.broadcast %4 : vector<16x1xf32> to vector<16x32xf32>
    %13 = arith.subf %0, %12 : vector<16x32xf32>
    %cst_4 = arith.constant 9.99999974E-6 : f32
    %14 = vector.broadcast %cst_4 : f32 to vector<16x1xf32>
    %15 = arith.addf %11, %14 : vector<16x1xf32>
    %16 = math.rsqrt %15 : vector<16x1xf32>
    %17 = vector.broadcast %16 : vector<16x1xf32> to vector<16x32xf32>
    %18 = arith.mulf %13, %17 : vector<16x32xf32>
    %c0_5 = arith.constant 0 : index
    %c0_6 = arith.constant 0 : index
    %19 = vector.load %arg3[%c0_5, %c0_6] : memref<1x32xf32, #tpu.memory_space<vmem>>, vector<1x32xf32>
    %20 = vector.broadcast %19 : vector<1x32xf32> to vector<16x32xf32>
    %21 = arith.mulf %18, %20 : vector<16x32xf32>
    %c0_7 = arith.constant 0 : index
    %c0_8 = arith.constant 0 : index
    %22 = vector.load %arg4[%c0_7, %c0_8] : memref<1x32xf32, #tpu.memory_space<vmem>>, vector<1x32xf32>
    %23 = vector.broadcast %22 : vector<1x32xf32> to vector<16x32xf32>
    %24 = arith.addf %21, %23 : vector<16x32xf32>
    %25 = arith.truncf %24 : vector<16x32xf32> to vector<16x32xbf16>
    %c0_9 = arith.constant 0 : index
    %c0_10 = arith.constant 0 : index
    %26 = vector.load %arg5[%c0_9, %c0_10] : memref<32x64xbf16, #tpu.memory_space<vmem>>, vector<32x64xbf16>
    %cst_11 = arith.constant dense<0.000000e+00> : vector<16x64xf32>
    %27 = tpu.matmul %25, %26, %cst_11 {dimension_numbers = #tpu.dot_dimension_numbers<[1], [0], [0], [1], [0, 0, 1, 1], [], []>} : vector<16x32xbf16>, vector<32x64xbf16>, vector<16x64xf32> -> vector<16x64xf32>
    %c0_12 = arith.constant 0 : index
    %c0_13 = arith.constant 0 : index
    %28 = vector.load %arg6[%c0_12, %c0_13] : memref<1x64xf32, #tpu.memory_space<vmem>>, vector<1x64xf32>
    %29 = vector.broadcast %28 : vector<1x64xf32> to vector<16x64xf32>
    %30 = arith.addf %27, %29 : vector<16x64xf32>
    %31 = vector.extract_strided_slice %30 {offsets = [0, 0], sizes = [16, 32], strides = [1, 1]} : vector<16x64xf32> to vector<16x32xf32>
    %32 = vector.shape_cast %31 : vector<16x32xf32> to vector<2x8x32xf32>
    %33 = arith.truncf %32 : vector<2x8x32xf32> to vector<2x8x32xbf16>
    %34 = vector.extract_strided_slice %30 {offsets = [0, 32], sizes = [16, 32], strides = [1, 1]} : vector<16x64xf32> to vector<16x32xf32>
    %35 = vector.shape_cast %34 : vector<16x32xf32> to vector<2x8x32xf32>
    %36 = arith.truncf %35 : vector<2x8x32xf32> to vector<2x8x32xbf16>
    "tpu.trace_start"() <{level = 10 : i32, message = "bqd,bkd->bqk"}> : () -> ()
    %cst_14 = arith.constant dense<0.000000e+00> : vector<2x8x8xf32>
    %37 = tpu.matmul %33, %36, %cst_14 {dimension_numbers = #tpu.dot_dimension_numbers<[2], [2], [1], [1], [0, 0, 0, 1, 1, 1], [0], [0]>} : vector<2x8x32xbf16>, vector<2x8x32xbf16>, vector<2x8x8xf32> -> vector<2x8x8xf32>
    "tpu.trace_stop"() : () -> ()
    %c0_15 = arith.constant 0 : index
    %c0_16 = arith.constant 0 : index
    %38 = vector.load %arg2[%c0_15, %c0_16] : memref<2x8xf32, #tpu.memory_space<vmem>>, vector<2x8xf32>
    %39 = vector.shape_cast %38 : vector<2x8xf32> to vector<2x1x8xf32>
    %cst_17 = arith.constant 0.000000e+00 : f32
    %40 = vector.broadcast %cst_17 : f32 to vector<2x1x8xf32>
    %41 = arith.cmpf oeq, %39, %40 : vector<2x1x8xf32>
    %cst_18 = arith.constant -1.000000e+09 : f32
    %42 = vector.shape_cast %41 : vector<2x1x8xi1> to vector<2x1x8xi1>
    %43 = vector.broadcast %42 : vector<2x1x8xi1> to vector<2x8x8xi1>
    %44 = vector.broadcast %cst_18 : f32 to vector<2x8x8xf32>
    %45 = arith.select %43, %44, %37 : vector<2x8x8xi1>, vector<2x8x8xf32>
    %cst_19 = arith.constant dense<0xFF800000> : vector<2x8xf32>
    %46 = vector.multi_reduction <maximumf>, %45, %cst_19 [2] : vector<2x8x8xf32> to vector<2x8xf32>
    %47 = vector.shape_cast %46 : vector<2x8xf32> to vector<2x8x1xf32>
    %48 = vector.broadcast %47 : vector<2x8x1xf32> to vector<2x8x8xf32>
    %49 = arith.subf %45, %48 : vector<2x8x8xf32>
    %50 = math.exp %49 : vector<2x8x8xf32>
    %cst_20 = arith.constant dense<0.000000e+00> : vector<2x8xf32>
    %51 = vector.multi_reduction <add>, %50, %cst_20 [2] : vector<2x8x8xf32> to vector<2x8xf32>
    %52 = vector.shape_cast %51 : vector<2x8xf32> to vector<2x8x1xf32>
    %53 = tpu.reciprocal %52 : vector<2x8x1xf32> -> vector<2x8x1xf32>
    %54 = vector.broadcast %53 : vector<2x8x1xf32> to vector<2x8x8xf32>
    %55 = arith.mulf %50, %54 : vector<2x8x8xf32>
    %56 = arith.truncf %55 : vector<2x8x8xf32> to vector<2x8x8xbf16>
    "tpu.trace_start"() <{level = 10 : i32, message = "bqk,bkd->bqd"}> : () -> ()
    %cst_21 = arith.constant dense<0.000000e+00> : vector<2x8x32xf32>
    %57 = tpu.matmul %56, %36, %cst_21 {dimension_numbers = #tpu.dot_dimension_numbers<[2], [1], [1], [2], [0, 0, 0, 1, 1, 2], [0], [0]>} : vector<2x8x8xbf16>, vector<2x8x32xbf16>, vector<2x8x32xf32> -> vector<2x8x32xf32>
    "tpu.trace_stop"() : () -> ()
    %58 = vector.shape_cast %57 : vector<2x8x32xf32> to vector<16x32xf32>
    %59 = arith.truncf %58 : vector<16x32xf32> to vector<16x32xbf16>
    %c0_22 = arith.constant 0 : index
    %c0_23 = arith.constant 0 : index
    %60 = vector.load %arg7[%c0_22, %c0_23] : memref<32x32xbf16, #tpu.memory_space<vmem>>, vector<32x32xbf16>
    %cst_24 = arith.constant dense<0.000000e+00> : vector<16x32xf32>
    %61 = tpu.matmul %59, %60, %cst_24 {dimension_numbers = #tpu.dot_dimension_numbers<[1], [0], [0], [1], [0, 0, 1, 1], [], []>} : vector<16x32xbf16>, vector<32x32xbf16>, vector<16x32xf32> -> vector<16x32xf32>
    %c0_25 = arith.constant 0 : index
    %c0_26 = arith.constant 0 : index
    %62 = vector.load %arg8[%c0_25, %c0_26] : memref<1x32xf32, #tpu.memory_space<vmem>>, vector<1x32xf32>
    %63 = vector.broadcast %62 : vector<1x32xf32> to vector<16x32xf32>
    %64 = arith.addf %61, %63 : vector<16x32xf32>
    %65 = arith.addf %0, %64 : vector<16x32xf32>
    %cst_27 = arith.constant dense<0.000000e+00> : vector<16xf32>
    %66 = vector.multi_reduction <add>, %65, %cst_27 [1] : vector<16x32xf32> to vector<16xf32>
    %67 = vector.shape_cast %66 : vector<16xf32> to vector<16x1xf32>
    %cst_28 = arith.constant 3.200000e+01 : f32
    %68 = vector.broadcast %cst_28 : f32 to vector<16x1xf32>
    %69 = arith.divf %67, %68 : vector<16x1xf32>
    %70 = vector.broadcast %69 : vector<16x1xf32> to vector<16x32xf32>
    %71 = arith.subf %65, %70 : vector<16x32xf32>
    %72 = arith.mulf %71, %71 : vector<16x32xf32>
    %cst_29 = arith.constant dense<0.000000e+00> : vector<16xf32>
    %73 = vector.multi_reduction <add>, %72, %cst_29 [1] : vector<16x32xf32> to vector<16xf32>
    %74 = vector.shape_cast %73 : vector<16xf32> to vector<16x1xf32>
    %cst_30 = arith.constant 3.200000e+01 : f32
    %75 = vector.broadcast %cst_30 : f32 to vector<16x1xf32>
    %76 = arith.divf %74, %75 : vector<16x1xf32>
    %77 = vector.broadcast %69 : vector<16x1xf32> to vector<16x32xf32>
    %78 = arith.subf %65, %77 : vector<16x32xf32>
    %cst_31 = arith.constant 9.99999974E-6 : f32
    %79 = vector.broadcast %cst_31 : f32 to vector<16x1xf32>
    %80 = arith.addf %76, %79 : vector<16x1xf32>
    %81 = math.rsqrt %80 : vector<16x1xf32>
    %82 = vector.broadcast %81 : vector<16x1xf32> to vector<16x32xf32>
    %83 = arith.mulf %78, %82 : vector<16x32xf32>
    %c0_32 = arith.constant 0 : index
    %c0_33 = arith.constant 0 : index
    %84 = vector.load %arg9[%c0_32, %c0_33] : memref<1x32xf32, #tpu.memory_space<vmem>>, vector<1x32xf32>
    %85 = vector.broadcast %84 : vector<1x32xf32> to vector<16x32xf32>
    %86 = arith.mulf %83, %85 : vector<16x32xf32>
    %c0_34 = arith.constant 0 : index
    %c0_35 = arith.constant 0 : index
    %87 = vector.load %arg10[%c0_34, %c0_35] : memref<1x32xf32, #tpu.memory_space<vmem>>, vector<1x32xf32>
    %88 = vector.broadcast %87 : vector<1x32xf32> to vector<16x32xf32>
    %89 = arith.addf %86, %88 : vector<16x32xf32>
    %90 = arith.truncf %89 : vector<16x32xf32> to vector<16x32xbf16>
    %c0_36 = arith.constant 0 : index
    %c0_37 = arith.constant 0 : index
    %91 = vector.load %arg11[%c0_36, %c0_37] : memref<32x1024xbf16, #tpu.memory_space<vmem>>, vector<32x1024xbf16>
    %cst_38 = arith.constant dense<0.000000e+00> : vector<16x1024xf32>
    %92 = tpu.matmul %90, %91, %cst_38 {dimension_numbers = #tpu.dot_dimension_numbers<[1], [0], [0], [1], [0, 0, 1, 1], [], []>} : vector<16x32xbf16>, vector<32x1024xbf16>, vector<16x1024xf32> -> vector<16x1024xf32>
    %c0_39 = arith.constant 0 : index
    %c0_40 = arith.constant 0 : index
    %93 = vector.load %arg12[%c0_39, %c0_40] : memref<1x1024xf32, #tpu.memory_space<vmem>>, vector<1x1024xf32>
    %94 = vector.broadcast %93 : vector<1x1024xf32> to vector<16x1024xf32>
    %95 = arith.addf %92, %94 : vector<16x1024xf32>
    %cst_41 = arith.constant 0.000000e+00 : f32
    %96 = vector.broadcast %cst_41 : f32 to vector<16x1024xf32>
    %97 = arith.maximumf %95, %96 : vector<16x1024xf32>
    %98 = arith.truncf %97 : vector<16x1024xf32> to vector<16x1024xbf16>
    %c0_42 = arith.constant 0 : index
    %c0_43 = arith.constant 0 : index
    %99 = vector.load %arg13[%c0_42, %c0_43] : memref<1024x32xbf16, #tpu.memory_space<vmem>>, vector<1024x32xbf16>
    %cst_44 = arith.constant dense<0.000000e+00> : vector<16x32xf32>
    %100 = tpu.matmul %98, %99, %cst_44 {dimension_numbers = #tpu.dot_dimension_numbers<[1], [0], [0], [1], [0, 0, 1, 1], [], []>} : vector<16x1024xbf16>, vector<1024x32xbf16>, vector<16x32xf32> -> vector<16x32xf32>
    %c0_45 = arith.constant 0 : index
    %c0_46 = arith.constant 0 : index
    %101 = vector.load %arg14[%c0_45, %c0_46] : memref<1x32xf32, #tpu.memory_space<vmem>>, vector<1x32xf32>
    %102 = vector.broadcast %101 : vector<1x32xf32> to vector<16x32xf32>
    %103 = arith.addf %100, %102 : vector<16x32xf32>
    %104 = arith.addf %65, %103 : vector<16x32xf32>
    %c0_47 = arith.constant 0 : index
    %c0_48 = arith.constant 0 : index
    %105 = vector.load %arg15[%c0_47, %c0_48] : memref<16x32xf32, #tpu.memory_space<vmem>>, vector<16x32xf32>
    tpu.vector_store %arg15[%c0_47, %c0_48], %104 {strides = array<i32>} : memref<16x32xf32, #tpu.memory_space<vmem>>, vector<16x32xf32>,
    %c0_49 = arith.constant 0 : index
    %c0_50 = arith.constant 0 : index
    %c0_51 = arith.constant 0 : index
    %106 = vector.load %arg16[%c0_49, %c0_50, %c0_51] : memref<2x8x8xf32, #tpu.memory_space<vmem>>, vector<2x8x8xf32>
    tpu.vector_store %arg16[%c0_49, %c0_50, %c0_51], %55 {strides = array<i32>} : memref<2x8x8xf32, #tpu.memory_space<vmem>>, vector<2x8x8xf32>,
    return
  }
  func.func @transform_0(%arg0: i32) -> (i32, i32) {
    %c0_i32 = arith.constant 0 : i32
    %c0_i32_0 = arith.constant 0 : i32
    %c0_i32_1 = arith.constant 0 : i32
    return %c0_i32, %c0_i32_0 : i32, i32
  }
  func.func @transform_1(%arg0: i32) -> (i32, i32) {
    %c0_i32 = arith.constant 0 : i32
    %c0_i32_0 = arith.constant 0 : i32
    %c0_i32_1 = arith.constant 0 : i32
    return %c0_i32, %c0_i32_0 : i32, i32
  }
  func.func @transform_2(%arg0: i32) -> (i32, i32) {
    %c0_i32 = arith.constant 0 : i32
    %c0_i32_0 = arith.constant 0 : i32
    %c0_i32_1 = arith.constant 0 : i32
    return %c0_i32, %c0_i32_0 : i32, i32
  }
  func.func @transform_3(%arg0: i32) -> (i32, i32) {
    %c0_i32 = arith.constant 0 : i32
    %c0_i32_0 = arith.constant 0 : i32
    %c0_i32_1 = arith.constant 0 : i32
    return %c0_i32, %c0_i32_0 : i32, i32
  }
  func.func @transform_4(%arg0: i32) -> (i32, i32) {
    %c0_i32 = arith.constant 0 : i32
    %c0_i32_0 = arith.constant 0 : i32
    %c0_i32_1 = arith.constant 0 : i32
    return %c0_i32, %c0_i32_0 : i32, i32
  }
  func.func @transform_5(%arg0: i32) -> (i32, i32) {
    %c0_i32 = arith.constant 0 : i32
    %c0_i32_0 = arith.constant 0 : i32
    %c0_i32_1 = arith.constant 0 : i32
    return %c0_i32, %c0_i32_0 : i32, i32
  }
  func.func @transform_6(%arg0: i32) -> (i32, i32) {
    %c0_i32 = arith.constant 0 : i32
    %c0_i32_0 = arith.constant 0 : i32
    %c0_i32_1 = arith.constant 0 : i32
    return %c0_i32, %c0_i32_0 : i32, i32
  }
  func.func @transform_7(%arg0: i32) -> (i32, i32) {
    %c0_i32 = arith.constant 0 : i32
    %c0_i32_0 = arith.constant 0 : i32
    %c0_i32_1 = arith.constant 0 : i32
    return %c0_i32, %c0_i32_0 : i32, i32
  }
  func.func @transform_8(%arg0: i32) -> (i32, i32) {
    %c0_i32 = arith.constant 0 : i32
    %c0_i32_0 = arith.constant 0 : i32
    %c0_i32_1 = arith.constant 0 : i32
    return %c0_i32, %c0_i32_0 : i32, i32
  }
  func.func @transform_9(%arg0: i32) -> (i32, i32) {
    %c0_i32 = arith.constant 0 : i32
    %c0_i32_0 = arith.constant 0 : i32
    %c0_i32_1 = arith.constant 0 : i32
    return %c0_i32, %c0_i32_0 : i32, i32
  }
  func.func @transform_10(%arg0: i32) -> (i32, i32) {
    %c0_i32 = arith.constant 0 : i32
    %c0_i32_0 = arith.constant 0 : i32
    %c0_i32_1 = arith.constant 0 : i32
    return %c0_i32, %c0_i32_0 : i32, i32
  }
  func.func @transform_11(%arg0: i32) -> (i32, i32) {
    %c0_i32 = arith.constant 0 : i32
    %c0_i32_0 = arith.constant 0 : i32
    %c0_i32_1 = arith.constant 0 : i32
    return %c0_i32, %c0_i32_0 : i32, i32
  }
  func.func @transform_12(%arg0: i32) -> (i32, i32) {
    %c0_i32 = arith.constant 0 : i32
    %c0_i32_0 = arith.constant 0 : i32
    %c0_i32_1 = arith.constant 0 : i32
    return %c0_i32, %c0_i32_0 : i32, i32
  }
  func.func @transform_13(%arg0: i32) -> (i32, i32) {
    %c0_i32 = arith.constant 0 : i32
    %c0_i32_0 = arith.constant 0 : i32
    %c0_i32_1 = arith.constant 0 : i32
    return %c0_i32, %c0_i32_0 : i32, i32
  }
  func.func @transform_14(%arg0: i32) -> (i32, i32) {
    %c0_i32 = arith.constant 0 : i32
    %c0_i32_0 = arith.constant 0 : i32
    %c0_i32_1 = arith.constant 0 : i32
    return %c0_i32, %c0_i32_0 : i32, i32
  }
  func.func @transform_15(%arg0: i32) -> (i32, i32, i32) {
    %c0_i32 = arith.constant 0 : i32
    %c0_i32_0 = arith.constant 0 : i32
    %c0_i32_1 = arith.constant 0 : i32
    %c0_i32_2 = arith.constant 0 : i32
    return %c0_i32, %c0_i32_0, %c0_i32_1 : i32, i32, i32
  }
}

</mosaic_0001>

<bundles_post_ra>
// kernel: tpu_custom_call.1
= control target key start
LH: loop header
LB: loop body
LE: loop exit
PB: predicated region body
PF: predicated region fallthrough
CT: control target
= control target key end

     0   :  { %21 = vsyncpa [#allocation3], 0  ;;  %vm54_vm0 = vcmask 261120   ;;  %s2360_s0 = inlined_call_operand.vmem [shape: f32[16,32], index: 0, kind: input, shape index: {}]   ;;  %s2361_s1 = inlined_call_operand.vmem [shape: f32[2,8], index: 1, kind: input, shape index: {}]   ;;  %s2362_s2 = inlined_call_operand.vmem [shape: f32[1,32], index: 2, kind: input, shape index: {}]   ;;  %s2363_s3 = inlined_call_operand.vmem [shape: f32[1,32], index: 3, kind: input, shape index: {}]   ;;  %s2364_s4 = inlined_call_operand.vmem [shape: bf16[32,64], index: 4, kind: input, shape index: {}]   ;;  %s2365_s5 = inlined_call_operand.vmem [shape: f32[1,64], index: 5, kind: input, shape index: {}]   ;;  %s2366_s6 = inlined_call_operand.vmem [shape: bf16[32,32], index: 6, kind: input, shape index: {}]   ;;  %s2367_s7 = inlined_call_operand.vmem [shape: f32[1,32], index: 7, kind: input, shape index: {}]   ;;  %s2368_s8 = inlined_call_operand.vmem [shape: f32[1,32], index: 8, kind: input, shape index: {}]   ;;  %s2369_s9 = inlined_call_operand.vmem [shape: f32[1,32], index: 9, kind: input, shape index: {}]   ;;  %s2370_s10 = inlined_call_operand.vmem [shape: bf16[32,1024], index: 10, kind: input, shape index: {}]   ;;  %s2371_s11 = inlined_call_operand.vmem [shape: f32[1,1024], index: 11, kind: input, shape index: {}]   ;;  %s2372_s12 = inlined_call_operand.vmem [shape: bf16[1024,32], index: 12, kind: input, shape index: {}]   ;;  %s2373_s13 = inlined_call_operand.vmem [shape: f32[1,32], index: 13, kind: input, shape index: {}]   ;;  %s2374_s14 = inlined_call_operand.hbm [shape: f32[16,32], index: 14, kind: output, shape index: {0}]   ;;  %s2375_s15 = inlined_call_operand.hbm [shape: f32[2,8,8], index: 15, kind: output, shape index: {1}]  }
   0x1   :  { %v1936_v0 = vld [vmem:[%s2360_s0] sm:$0xff] }
   0x2   :  { %v55_v1 = vsel %vm54_vm0, %v1936_v0, 0.0 }
   0x3   :  { %56 = vadd.xlane.f32.xlu0 %v55_v1 }
   0x4   :  { %22 = vsyncpa [#allocation5], 0  ;;  %v1943_v2 = vld [vmem:[%s2360_s0 + $0x8] sm:$0xff]  ;;  %v1846_v4 = vmov 32.0   ;;  %v1678_v23 = vld [vmem:[%s2364_s4] sm:$0xff]  ;;  %vm274_vm8 = vcmask 1043456  }
   0x5   :  { %v58_v3 = vsel %vm54_vm0, %v1943_v2, 0.0  ;;  %1776 = vrcp.f32 %v1846_v4  ;;  %v1679_v21 = vld [vmem:[%s2364_s4 + $0x8] sm:$0xff]  ;;  %v1769_v42 = vld [vmem:[%s2362_s2] ss:$0 sm:$0xff]  ;;  %s1847_s2 = smov 96   ;;  %vm220_vm11 = vcmask 64512  }
   0x6   :  { %148 = vmatpush.bf16.msra.mxu0 %v1679_v21  ;;  %v1770_v47 = vld [vmem:[%s2363_s3] ss:$0 sm:$0xff]  ;;  %s1298_s22 = sshll.u32 %s2374_s14, 4  ;;  %s1299_s22 = int_to_ptr.hbm [resolvable:$true] %s1298_s22 }
   0x7   :  { %v1771_v52 = vld [vmem:[%s2365_s5] ss:$0 sm:$0xff] }
   0xa   :  { %149 = vmatpush.bf16.msra.mxu0 %v1678_v23 }
   0xb   :  { %59 = vadd.xlane.f32.xlu0 %v58_v3  ;;  %v1777_v5 = vpop.eup %1776 }
   0xc   :  { %v62_v6 = vmul.f32 32.0, %v1777_v5  ;;  %vm66_vm1 = vweird.f32 %v1777_v5 }
   0xe   :  { %v63_v7 = vsub.f32 1.0, %v62_v6 }
  0x10   :  { %v64_v8 = vmul.f32 %v1777_v5, %v63_v7  ;;  %v206_v7 = vld [vmem:[%s2361_s1] sm:$0x3] }
  0x11   :  { %vm210_vm9 = vcmp.eq.f32.partialorder %v206_v7, 0.0 }
  0x12   :  { %v65_v9 = vadd.f32 %v1777_v5, %v64_v8  ;;  %v1848_v8 = vmov 0  }
  0x14   :  { %v1947_v10 = vsel %vm66_vm1, %v1777_v5, %v65_v9  ;;  %v212_v9 = vsel %vm210_vm9, 1, %v1848_v8 }
  0x76   :  { %v57_v11 = vpop.xlane.xlu0 %56 }
  0x77   :  { %v68_v12 = vmul.f32 %v1947_v10, %v57_v11  ;;  %v214_v11 = vperm.slane %v212_v9, 0 }
  0x79   :  { %v70_v13 = vsub.f32 %v1936_v0, %v68_v12  ;;  %vm216_vm10 = vcmp.eq.s32.totalorder %v214_v11, 1  ;;  %v208_v12 = vrot.slane %v206_v7, 1 }
  0x7b   :  { %v72_v14 = vmul.f32 %v70_v13, %v70_v13  ;;  %vm211_vm12 = vcmp.eq.f32.partialorder %v208_v12, 0.0 }
  0x7d   :  { %v74_v15 = vsel %vm54_vm0, %v72_v14, 0.0 }
  0x7e   :  { %75 = vadd.xlane.f32.xlu1 %v74_v15  ;;  %v60_v16 = vpop.xlane.xlu0 %59 }
  0x7f   :  { %v69_v17 = vmul.f32 %v1947_v10, %v60_v16  ;;  %v213_v16 = vsel %vm211_vm12, 1, %v1848_v8 }
  0x81   :  { %v71_v18 = vsub.f32 %v1943_v2, %v69_v17 }
  0x83   :  { %v73_v19 = vmul.f32 %v71_v18, %v71_v18 }
  0x85   :  { %v77_v20 = vsel %vm54_vm0, %v73_v19, 0.0 }
  0x86   :  { %78 = vadd.xlane.f32.xlu1 %v77_v20 }
  0xf1   :  { %v76_v22 = vpop.xlane.xlu1 %75 }
  0xf2   :  { %v80_v24 = vmul.f32 %v76_v22, %v1947_v10 }
  0xf4   :  { %v82_v25 = vadd.f32 1e-05, %v80_v24 }
  0xf6   :  { %1778 = vrsqrt.f32 %v82_v25  ;;  %vm90_vm3 = vweird.f32 %v82_v25 }
  0xf9   :  { %v79_v26 = vpop.xlane.xlu1 %78 }
  0xfa   :  { %v81_v27 = vmul.f32 %v79_v26, %v1947_v10 }
  0xfc   :  { %v1779_v28 = vpop.eup %1778  ;;  %v83_v29 = vadd.f32 1e-05, %v81_v27 }
  0xfd   :  { %v85_v30 = vmul.f32 %v1779_v28, %v82_v25  ;;  %vm91_vm2 = vweird.f32 %v1779_v28 }
  0xfe   :  { %1780 = vrsqrt.f32 %v83_v29  ;;  %vm92_vm4 = vmor %vm90_vm3, %vm91_vm2  ;;  %vm100_vm6 = vweird.f32 %v83_v29 }
  0xff   :  { %v86_v31 = vmul.f32 %v1779_v28, %v85_v30 }
 0x101   :  { %v87_v32 = vmul.f32 0.5, %v86_v31 }
 0x103   :  { %v88_v33 = vsub.f32 1.5, %v87_v32 }
 0x104   :  { %v1781_v34 = vpop.eup %1780 }
 0x105   :  { %v89_v35 = vmul.f32 %v1779_v28, %v88_v33  ;;  %v95_v36 = vmul.f32 %v1781_v34, %v83_v29  ;;  %vm101_vm5 = vweird.f32 %v1781_v34 }
 0x106   :  { %vm102_vm7 = vmor %vm100_vm6, %vm101_vm5 }
 0x107   :  { %v96_v37 = vmul.f32 %v1781_v34, %v95_v36  ;;  %v93_v38 = vsel %vm92_vm4, %v1779_v28, %v89_v35 }
 0x108   :  { %v104_v41 = vmul.f32 %v93_v38, %v70_v13 }
 0x109   :  { %v97_v39 = vmul.f32 0.5, %v96_v37 }
 0x10a   :  { %v110_v46 = vmul.f32 %v1769_v42, %v104_v41 }
 0x10b   :  { %v98_v40 = vsub.f32 1.5, %v97_v39 }
 0x10c   :  { %v116_v49 = vadd.f32 %v1770_v47, %v110_v46 }
 0x10d   :  { %v99_v43 = vmul.f32 %v1781_v34, %v98_v40 }
 0x10f   :  { %v103_v44 = vsel %vm102_vm7, %v1781_v34, %v99_v43 }
 0x110   :  { %v105_v45 = vmul.f32 %v103_v44, %v71_v18  ;;  %v215_v18 = vperm.slane %v213_v16, 0 }
 0x112   :  { %v111_v48 = vmul.f32 %v1769_v42, %v105_v45  ;;  %vm217_vm13 = vcmp.eq.s32.totalorder %v215_v18, 1 }
 0x114   :  { %v117_v50 = vadd.f32 %v1770_v47, %v111_v48 }
 0x116   :  { %v118_v51 = vpack.c.bf16 %v117_v50, %v116_v49 }
 0x118   :  { %1336 = vmatmul.msk.bf16.vlgmr.msra.gmra.mxu0 %vm54_vm0, %v118_v51 }
 0x195   :  { %v151_v53 = vpop.f32.mrf.mxu0 }
 0x196   :  { %v152_v54 = vadd.f32 %v1771_v52, %v151_v53 }
 0x198   :  { %v156_v55 = vpack.c.bf16 %v152_v54, %v152_v54 }
 0x19a   :  { %v159_v56 = vunpack.c.l.b16 %v156_v55 }
 0x19c   :  { %v160_v57 = vpack.c.b16 %v159_v56, %v159_v56 }
 0x19d   :  { %v153_v58 = vpop.f32.mrf.mxu0 }
 0x19e   :  { %v154_v59 = vadd.f32 %v1771_v52, %v153_v58  ;;  %161 = vrot.lane.b32.xlu2 %v160_v57, %s1847_s2 }
 0x1a0   :  { %v157_v60 = vpack.c.bf16 %v154_v59, %v154_v59  ;;  %v1681_v59 = vld [vmem:[%s2366_s6 + $0x8] sm:$0xff] }
 0x1a1   :  { %338 = vmatpush.bf16.msrb.mxu0 %v1681_v59  ;;  %v1400_v59 = vld [vmem:[%s2370_s10 + $0x50] sm:$0xf] }
 0x1a2   :  { %v183_v61 = vunpack.c.l.b16 %v157_v60 }
 0x1a4   :  { %v184_v62 = vpack.c.b16 %v183_v61, %v183_v61 }
 0x1a6   :  { %185 = vrot.lane.b32.xlu2 %v184_v62, %s1847_s2 }
 0x1f8   :  { %v162_v63 = vpop.permute.xlu2 %161 }
 0x1f9   :  { %v167_v1 = vsel %vm54_vm0, %v162_v63, 0  ;;  %v275_v3 = vsel %vm274_vm8, %v162_v63, 0 }
 0x1fa   :  { %176 = vmatpush.bf16.xpose.msra.mxu1 %v167_v1  ;;  %284 = vmatpush.bf16.msra.mxu3 %v275_v3 }
 0x200   :  { %v186_v4 = vpop.permute.xlu2 %185 }
 0x201   :  { %1337 = vmatmul.msk.bf16.vlgmr.msra.gmra.mxu1 %vm54_vm0, %v156_v55  ;;  %v191_v5 = vsel %vm54_vm0, %v186_v4, 0  ;;  %v293_v6 = vsel %vm274_vm8, %v186_v4, 0  ;;  %v1772_v4 = vld [vmem:[%s2367_s7] ss:$0 sm:$0xff]  ;;  %s1851_s7 = smov 8  }
 0x202   :  { %200 = vmatpush.bf16.xpose.msra.mxu2 %v191_v5  ;;  %302 = vmatpush.bf16.msrb.mxu3 %v293_v6 }
 0x209   :  { %1338 = vmatmul.msk.bf16.vlgmr.msra.gmra.mxu2 %vm54_vm0, %v157_v60  ;;  %v1680_v60 = vld [vmem:[%s2366_s6] sm:$0xff]  ;;  %s1850_s6 = smov 128  }
 0x20a   :  { %339 = vmatpush.bf16.msrb.mxu0 %v1680_v60  ;;  %v1693_v60 = vld [vmem:[%s2370_s10 + $0x5c] sm:$0xf] }
 0x27e   :  { %v178_v13 = vpop.f32.mrf.mxu1 }
 0x27f   :  { %v218_v14 = vsel %vm216_vm10, -1e+09, %v178_v13 }
 0x280   :  { %v221_v15 = vsel %vm220_vm11, %v218_v14, -inf }
 0x281   :  { %222 = vmax.xlane.f32.xlu0 %v221_v15 }
 0x286   :  { %v180_v17 = vpop.f32.mrf.mxu1 }
 0x28c   :  { %v202_v19 = vpop.f32.mrf.mxu2 }
 0x28d   :  { %v219_v20 = vsel %vm217_vm13, -1e+09, %v202_v19 }
 0x28e   :  { %v224_v21 = vsel %vm220_vm11, %v219_v20, -inf }
 0x28f   :  { %225 = vmax.xlane.f32.xlu1 %v224_v21 }
 0x294   :  { %v204_v22 = vpop.f32.mrf.mxu2 }
 0x295   :  { %v1690_v22 = vld [vmem:[%s2370_s10 + $0x44] sm:$0xf] }
 0x2f4   :  { %v223_v23 = vpop.xlane.xlu0 %222 }
 0x2f5   :  { %v227_v24 = vsub.f32 %v218_v14, %v223_v23  ;;  %v1386_v23 = vld [vmem:[%s2370_s10 + $0x60] sm:$0xf0] }
 0x2f7   :  { %v229_v25 = vmul.f32 1.442695, %v227_v24  ;;  %v1392_v24 = vld [vmem:[%s2370_s10 + $0x48] sm:$0xf] }
 0x2f9   :  { %1782 = vpow2.f32 %v229_v25  ;;  %v1389_v25 = vor.u32 %v1690_v22, %v1386_v23 }
 0x2fb   :  { %542 = vmatpush.bf16.msrb.mxu2 %v1389_v25 }
 0x2ff   :  { %v1783_v26 = vpop.eup %1782 }
 0x300   :  { %v233_v27 = vsel %vm220_vm11, %v1783_v26, 0.0 }
 0x301   :  { %234 = vadd.xlane.f32.xlu2 %v233_v27  ;;  %v1384_v27 = vld [vmem:[%s2370_s10 + $0x40] sm:$0xf] }
 0x302   :  { %v226_v28 = vpop.xlane.xlu1 %225 }
 0x303   :  { %v228_v29 = vsub.f32 %v219_v20, %v226_v28  ;;  %v1694_v28 = vld [vmem:[%s2370_s10 + $0x5c] sm:$0xf0] }
 0x305   :  { %v231_v30 = vmul.f32 1.442695, %v228_v29 }
 0x307   :  { %1784 = vpow2.f32 %v231_v30  ;;  %v1385_v30 = vor.u32 %v1694_v28, %v1384_v27  ;;  %v1773_v28 = vld [vmem:[%s2368_s8] ss:$0 sm:$0xff]  ;;  %s1311_s8 = sshll.u32 %s2375_s15, 4  ;;  %s1312_s8 = int_to_ptr.hbm [resolvable:$true] %s1311_s8 }
 0x309   :  { %528 = vmatpush.bf16.msrb.mxu1 %v1385_v30 }
 0x30d   :  { %v1785_v31 = vpop.eup %1784 }
 0x30e   :  { %v236_v32 = vsel %vm220_vm11, %v1785_v31, 0.0 }
 0x30f   :  { %237 = vadd.xlane.f32.xlu0 %v236_v32  ;;  %v1394_v32 = vld [vmem:[%s2370_s10 + $0x68] sm:$0xf0] }
 0x374   :  { %v235_v33 = vpop.xlane.xlu2 %234 }
 0x375   :  { %1786 = vrcp.f32 %v235_v33  ;;  %v250_v37 = vand.u32 2147483648, %v235_v33  ;;  %v248_v39 = vand.u32 2147483647, %v235_v33  ;;  %vm244_vm15 = vweird.f32 %v235_v33 }
 0x377   :  { %v251_v42 = vor.u32 1.1754944e-38, %v250_v37  ;;  %vm249_vm2 = vcmp.eq.f32.partialorder %v248_v39, 8.507059e+37  ;;  %v1354_v37 = vld [vmem:[%s2370_s10 + $0x20] sm:$0xf0] }
 0x37b   :  { %v1787_v34 = vpop.eup %1786 }
 0x37c   :  { %v240_v35 = vmul.f32 %v1787_v34, %v235_v33  ;;  %vm245_vm14 = vweird.f32 %v1787_v34 }
 0x37d   :  { %vm246_vm1 = vmor %vm244_vm15, %vm245_vm14 }
 0x37e   :  { %v241_v36 = vsub.f32 1.0, %v240_v35 }
 0x380   :  { %v242_v38 = vmul.f32 %v1787_v34, %v241_v36  ;;  %v1682_v36 = vld [vmem:[%s2370_s10 + $0x4] sm:$0xf] }
 0x381   :  { %v1357_v39 = vor.u32 %v1682_v36, %v1354_v37 }
 0x382   :  { %v243_v40 = vadd.f32 %v1787_v34, %v242_v38  ;;  %v238_v41 = vpop.xlane.xlu0 %237  ;;  %v1360_v38 = vld [vmem:[%s2370_s10 + $0x8] sm:$0xf] }
 0x383   :  { %1788 = vrcp.f32 %v238_v41  ;;  %v264_v50 = vand.u32 2147483648, %v238_v41  ;;  %v262_v52 = vand.u32 2147483647, %v238_v41  ;;  %vm258_vm4 = vweird.f32 %v238_v41  ;;  %543 = vmatpush.bf16.msrb.mxu2 %v1357_v39  ;;  %v1705_v39 = vld [vmem:[%s2372_s12 + $0x38] sm:$0xff] }
 0x384   :  { %v247_v43 = vsel %vm246_vm1, %v1787_v34, %v243_v40  ;;  %v1687_v40 = vld [vmem:[%s2370_s10 + $0x24] sm:$0xf0] }
 0x385   :  { %v252_v44 = vsel %vm249_vm2, %v251_v42, %v247_v43  ;;  %v265_v54 = vor.u32 1.1754944e-38, %v264_v50  ;;  %vm263_vm6 = vcmp.eq.f32.partialorder %v262_v52, 8.507059e+37  ;;  %v1686_v42 = vld [vmem:[%s2370_s10 + $0x1c] sm:$0xf0]  ;;  %v1692_v50 = vld [vmem:[%s2370_s10 + $0x54] sm:$0xf] }
 0x386   :  { %v267_v45 = vmul.f32 %v1783_v26, %v252_v44  ;;  %v1695_v26 = vld [vmem:[%s2370_s10 + $0x64] sm:$0xf0]  ;;  %v1361_v44 = vor.u32 %v1687_v40, %v1360_v38  ;;  %v1408_v52 = vld [vmem:[%s2370_s10 + $0x58] sm:$0xf] }
 0x387   :  { %v1393_v29 = vor.u32 %v1695_v26, %v1392_v24  ;;  %v1713_v40 = vld [vmem:[%s2372_s12 + $0x78] sm:$0xff] }
 0x388   :  { %v269_v46 = vpack.c.bf16 %v267_v45, %v267_v45  ;;  %1290 = vst.msk [vmem:[#allocation4] sm:$0xff] %vm220_vm11, %v267_v45 }
 0x389   :  { %v1789_v47 = vpop.eup %1788 }
 0x38a   :  { %v254_v48 = vmul.f32 %v1789_v47, %v238_v41  ;;  %1339 = vmatmul.msk.bf16.vlgmr.msra.gmra.mxu3 %vm220_vm11, %v269_v46  ;;  %vm259_vm3 = vweird.f32 %v1789_v47  ;;  %v1352_v41 = vld [vmem:[%s2370_s10] sm:$0xf]  ;;  %v1683_v46 = vld [vmem:[%s2370_s10 + $0xc] sm:$0xf] }
 0x38b   :  { %vm260_vm5 = vmor %vm258_vm4, %vm259_vm3  ;;  %556 = vmatpush.bf16.msra.mxu3 %v1393_v29  ;;  %v1353_v45 = vor.u32 %v1686_v42, %v1352_v41  ;;  %v1704_v41 = vld [vmem:[%s2372_s12 + $0x30] sm:$0xff] }
 0x38c   :  { %v255_v49 = vsub.f32 1.0, %v254_v48  ;;  %v1728_v42 = vld [vmem:[%s2372_s12 + $0xf0] sm:$0xff] }
 0x38d   :  { %529 = vmatpush.bf16.msrb.mxu1 %v1353_v45  ;;  %v1703_v45 = vld [vmem:[%s2372_s12 + $0x28] sm:$0xff] }
 0x38e   :  { %v256_v51 = vmul.f32 %v1789_v47, %v255_v49 }
 0x38f   :  { %557 = vmatpush.bf16.msra.mxu3 %v1361_v44  ;;  %v1720_v44 = vld [vmem:[%s2372_s12 + $0xb0] sm:$0xff] }
 0x390   :  { %v257_v53 = vadd.f32 %v1789_v47, %v256_v51  ;;  %v1402_v51 = vld [vmem:[%s2370_s10 + $0x70] sm:$0xf0] }
 0x392   :  { %v261_v55 = vsel %vm260_vm5, %v1789_v47, %v257_v53  ;;  %v1362_v47 = vld [vmem:[%s2370_s10 + $0x28] sm:$0xf0] }
 0x393   :  { %v266_v56 = vsel %vm263_vm6, %v265_v54, %v261_v55  ;;  %v1365_v48 = vor.u32 %v1683_v46, %v1362_v47  ;;  %v1405_v54 = vor.u32 %v1692_v50, %v1402_v51  ;;  %v1697_v55 = vld [vmem:[%s2370_s10 + $0x74] sm:$0xf0]  ;;  %v1727_v46 = vld [vmem:[%s2372_s12 + $0xe8] sm:$0xff]  ;;  %v1726_v50 = vld [vmem:[%s2372_s12 + $0xe0] sm:$0xff] }
 0x394   :  { %v268_v57 = vmul.f32 %v1785_v31, %v266_v56  ;;  %v1691_v31 = vld [vmem:[%s2370_s10 + $0x4c] sm:$0xf]  ;;  %v1684_v56 = vld [vmem:[%s2370_s10 + $0x14] sm:$0xf]  ;;  %v1710_v51 = vld [vmem:[%s2372_s12 + $0x60] sm:$0xff] }
 0x395   :  { %v1397_v34 = vor.u32 %v1691_v31, %v1394_v32  ;;  %598 = vmatpush.bf16.msra.mxu2 %v1405_v54  ;;  %v1774_v32 = vld [vmem:[%s2369_s9] ss:$0 sm:$0xff]  ;;  %v1711_v47 = vld [vmem:[%s2372_s12 + $0x68] sm:$0xff]  ;;  %v1725_v54 = vld [vmem:[%s2372_s12 + $0xd8] sm:$0xff] }
 0x396   :  { %1291 = vst.msk [vmem:[#allocation4 + $0x8] sm:$0xff] %vm220_vm11, %v268_v57  ;;  %v270_v58 = vpack.c.bf16 %v268_v57, %v268_v57  ;;  %v1370_v57 = vld [vmem:[%s2370_s10 + $0x30] sm:$0xf0] }
 0x397   :  { %570 = vmatpush.bf16.msra.mxu0 %v1397_v34 }
 0x39a   :  { %1340 = vmatmul.msk.bf16.vlgmr.msrb.gmra.mxu3 %vm220_vm11, %v270_v58  ;;  %v1409_v58 = vor.u32 %v1697_v55, %v1408_v52  ;;  %v1718_v52 = vld [vmem:[%s2372_s12 + $0xa0] sm:$0xff]  ;;  %v1709_v55 = vld [vmem:[%s2372_s12 + $0x58] sm:$0xff] }
 0x39b   :  { %571 = vmatpush.bf16.msra.mxu0 %v1365_v48  ;;  %v1719_v48 = vld [vmem:[%s2372_s12 + $0xa8] sm:$0xff] }
 0x39c   :  { %612 = vmatpush.bf16.msrb.mxu3 %v1409_v58  ;;  %v1724_v58 = vld [vmem:[%s2372_s12 + $0xd0] sm:$0xff] }
 0x40d   :  { %v286_v61 = vpop.f32.mrf.mxu3 }
 0x415   :  { %v288_v62 = vpop.f32.mrf.mxu3 }
 0x41d   :  { %v304_v63 = vpop.f32.mrf.mxu3 }
 0x41e   :  { %v308_v1 = vpack.c.bf16 %v304_v63, %v286_v61  ;;  %v1373_v63 = vor.u32 %v1684_v56, %v1370_v57  ;;  %v1717_v56 = vld [vmem:[%s2372_s12 + $0x98] sm:$0xff]  ;;  %v1700_v57 = vld [vmem:[%s2372_s12 + $0x10] sm:$0xff] }
 0x420   :  { %1349 = vmatmul.msk.bf16.vlgmr.msrb.gmra.mxu0 %vm54_vm0, %v308_v1  ;;  %599 = vmatpush.bf16.msra.mxu2 %v1373_v63  ;;  %v1722_v63 = vld [vmem:[%s2372_s12 + $0xc0] sm:$0xff] }
 0x425   :  { %v306_v3 = vpop.f32.mrf.mxu3 }
 0x426   :  { %v1410_v3 = vld [vmem:[%s2370_s10 + $0x78] sm:$0xf0] }
 0x49d   :  { %v341_v5 = vpop.f32.mrf.mxu0 }
 0x49e   :  { %v342_v6 = vadd.f32 %v1772_v4, %v341_v5 }
 0x4a0   :  { %v1999_v7 = vadd.f32 %v342_v6, %v1936_v0  ;;  %v1413_v6 = vor.u32 %v1693_v60, %v1410_v3  ;;  %v1699_v60 = vld [vmem:[%s2372_s12 + $0x8] sm:$0xff]  ;;  %v1761_v3 = vld [vmem:[%s2372_s12 + $0x1f8] sm:$0xff] }
 0x4a2   :  { %v348_v8 = vsel %vm54_vm0, %v1999_v7, 0.0  ;;  %626 = vmatpush.bf16.msrb.mxu0 %v1413_v6  ;;  %v1736_v6 = vld [vmem:[%s2372_s12 + $0x130] sm:$0xff] }
 0x4a3   :  { %349 = vadd.xlane.f32.xlu1 %v348_v8  ;;  %v1689_v8 = vld [vmem:[%s2370_s10 + $0x34] sm:$0xf0] }
 0x4a5   :  { %v343_v9 = vpop.f32.mrf.mxu0 }
 0x4a6   :  { %v344_v11 = vadd.f32 %v1772_v4, %v343_v9  ;;  %v1376_v4 = vld [vmem:[%s2370_s10 + $0x18] sm:$0xf]  ;;  %v1368_v9 = vld [vmem:[%s2370_s10 + $0x10] sm:$0xf] }
 0x4a8   :  { %v2004_v12 = vadd.f32 %v344_v11, %v1943_v2  ;;  %v1688_v11 = vld [vmem:[%s2370_s10 + $0x2c] sm:$0xf0] }
 0x4aa   :  { %v351_v13 = vsel %vm54_vm0, %v2004_v12, 0.0 }
 0x4ab   :  { %352 = vadd.xlane.f32.xlu0 %v351_v13  ;;  %v1377_v13 = vor.u32 %v1689_v8, %v1376_v4  ;;  %v1707_v4 = vld [vmem:[%s2372_s12 + $0x48] sm:$0xff]  ;;  %v1760_v8 = vld [vmem:[%s2372_s12 + $0x1f0] sm:$0xff] }
 0x4ad   :  { %613 = vmatpush.bf16.msrb.mxu3 %v1377_v13  ;;  %v1745_v13 = vld [vmem:[%s2372_s12 + $0x178] sm:$0xff] }
 0x516   :  { %v350_v14 = vpop.xlane.xlu1 %349 }
 0x517   :  { %v354_v15 = vmul.f32 %v350_v14, %v1947_v10  ;;  %v1369_v14 = vor.u32 %v1688_v11, %v1368_v9  ;;  %v1706_v9 = vld [vmem:[%s2372_s12 + $0x40] sm:$0xff] }
 0x518   :  { %v1714_v11 = vld [vmem:[%s2372_s12 + $0x80] sm:$0xff] }
 0x519   :  { %v2010_v16 = vsub.f32 %v1999_v7, %v354_v15  ;;  %v1685_v15 = vld [vmem:[%s2370_s10 + $0x1c] sm:$0xf] }
 0x51b   :  { %v358_v0 = vmul.f32 %v2010_v16, %v2010_v16 }
 0x51d   :  { %v360_v17 = vsel %vm54_vm0, %v358_v0, 0.0  ;;  %v1378_v0 = vld [vmem:[%s2370_s10 + $0x38] sm:$0xf0] }
 0x51e   :  { %v353_v18 = vpop.xlane.xlu0 %352  ;;  %361 = vadd.xlane.f32.xlu1 %v360_v17 }
 0x51f   :  { %v355_v2 = vmul.f32 %v353_v18, %v1947_v10  ;;  %v1381_v18 = vor.u32 %v1685_v15, %v1378_v0  ;;  %v1735_v15 = vld [vmem:[%s2372_s12 + $0x128] sm:$0xff] }
 0x520   :  { %v1759_v0 = vld [vmem:[%s2372_s12 + $0x1e8] sm:$0xff] }
 0x521   :  { %v2017_v19 = vsub.f32 %v2004_v12, %v355_v2  ;;  %627 = vmatpush.bf16.msrb.mxu0 %v1381_v18  ;;  %v1752_v18 = vld [vmem:[%s2372_s12 + $0x1b0] sm:$0xff] }
 0x523   :  { %v359_v20 = vmul.f32 %v2017_v19, %v2017_v19 }
 0x525   :  { %v363_v21 = vsel %vm54_vm0, %v359_v20, 0.0 }
 0x526   :  { %364 = vadd.xlane.f32.xlu0 %v363_v21 }
 0x591   :  { %v362_v33 = vpop.xlane.xlu1 %361 }
 0x592   :  { %v366_v35 = vmul.f32 %v362_v33, %v1947_v10 }
 0x594   :  { %v368_v43 = vadd.f32 1e-05, %v366_v35 }
 0x596   :  { %1790 = vrsqrt.f32 %v368_v43  ;;  %vm376_vm8 = vweird.f32 %v368_v43 }
 0x599   :  { %v365_v49 = vpop.xlane.xlu0 %364 }
 0x59a   :  { %v367_v53 = vmul.f32 %v365_v49, %v1947_v10  ;;  %v1696_v10 = vld [vmem:[%s2370_s10 + $0x6c] sm:$0xf0]  ;;  %v1702_v49 = vld [vmem:[%s2372_s12 + $0x20] sm:$0xff] }
 0x59b   :  { %v1401_v1 = vor.u32 %v1696_v10, %v1400_v59  ;;  %v1708_v59 = vld [vmem:[%s2372_s12 + $0x50] sm:$0xff] }
 0x59c   :  { %v1791_v61 = vpop.eup %1790  ;;  %v369_v62 = vadd.f32 1e-05, %v367_v53  ;;  %v1701_v53 = vld [vmem:[%s2372_s12 + $0x18] sm:$0xff]  ;;  %v1716_v10 = vld [vmem:[%s2372_s12 + $0x90] sm:$0xff] }
 0x59d   :  { %v371_v5 = vmul.f32 %v1791_v61, %v368_v43  ;;  %584 = vmatpush.bf16.msra.mxu1 %v1401_v1  ;;  %vm377_vm7 = vweird.f32 %v1791_v61  ;;  %v1712_v43 = vld [vmem:[%s2372_s12 + $0x70] sm:$0xff]  ;;  %v1737_v1 = vld [vmem:[%s2372_s12 + $0x138] sm:$0xff] }
 0x59e   :  { %1792 = vrsqrt.f32 %v369_v62  ;;  %vm378_vm9 = vmor %vm376_vm8, %vm377_vm7  ;;  %vm386_vm11 = vweird.f32 %v369_v62 }
 0x59f   :  { %v372_v17 = vmul.f32 %v1791_v61, %v371_v5  ;;  %v1715_v5 = vld [vmem:[%s2372_s12 + $0x88] sm:$0xff] }
 0x5a1   :  { %v373_v2 = vmul.f32 0.5, %v372_v17  ;;  %585 = vmatpush.bf16.msra.mxu1 %v1369_v14  ;;  %v1753_v14 = vld [vmem:[%s2372_s12 + $0x1b8] sm:$0xff]  ;;  %v1744_v17 = vld [vmem:[%s2372_s12 + $0x170] sm:$0xff] }
 0x5a3   :  { %v374_v20 = vsub.f32 1.5, %v373_v2  ;;  %v1734_v2 = vld [vmem:[%s2372_s12 + $0x120] sm:$0xff] }
 0x5a4   :  { %v1793_v21 = vpop.eup %1792 }
 0x5a5   :  { %v375_v22 = vmul.f32 %v1791_v61, %v374_v20  ;;  %v381_v23 = vmul.f32 %v1793_v21, %v369_v62  ;;  %vm387_vm10 = vweird.f32 %v1793_v21  ;;  %v1698_v62 = vld [vmem:[%s2372_s12] sm:$0xff] }
 0x5a6   :  { %vm388_vm12 = vmor %vm386_vm11, %vm387_vm10  ;;  %v1758_v20 = vld [vmem:[%s2372_s12 + $0x1e0] sm:$0xff] }
 0x5a7   :  { %v382_v24 = vmul.f32 %v1793_v21, %v381_v23  ;;  %v379_v25 = vsel %vm378_vm9, %v1791_v61, %v375_v22  ;;  %v1723_v61 = vld [vmem:[%s2372_s12 + $0xc8] sm:$0xff]  ;;  %v1733_v23 = vld [vmem:[%s2372_s12 + $0x118] sm:$0xff] }
 0x5a8   :  { %v390_v29 = vmul.f32 %v379_v25, %v2010_v16  ;;  %v1729_v16 = vld [vmem:[%s2372_s12 + $0xf8] sm:$0xff]  ;;  %v1751_v22 = vld [vmem:[%s2372_s12 + $0x1a8] sm:$0xff]  ;;  %v1742_v25 = vld [vmem:[%s2372_s12 + $0x160] sm:$0xff] }
 0x5a9   :  { %v383_v26 = vmul.f32 0.5, %v382_v24  ;;  %v1757_v24 = vld [vmem:[%s2372_s12 + $0x1d8] sm:$0xff] }
 0x5aa   :  { %v396_v33 = vmul.f32 %v1773_v28, %v390_v29  ;;  %v1741_v29 = vld [vmem:[%s2372_s12 + $0x158] sm:$0xff] }
 0x5ab   :  { %v384_v27 = vsub.f32 1.5, %v383_v26  ;;  %v1750_v26 = vld [vmem:[%s2372_s12 + $0x1a0] sm:$0xff] }
 0x5ac   :  { %v402_v36 = vadd.f32 %v1774_v32, %v396_v33  ;;  %v1740_v33 = vld [vmem:[%s2372_s12 + $0x150] sm:$0xff] }
 0x5ad   :  { %v385_v30 = vmul.f32 %v1793_v21, %v384_v27  ;;  %v1732_v27 = vld [vmem:[%s2372_s12 + $0x110] sm:$0xff] }
 0x5af   :  { %v389_v31 = vsel %vm388_vm12, %v1793_v21, %v385_v30  ;;  %v1743_v21 = vld [vmem:[%s2372_s12 + $0x168] sm:$0xff]  ;;  %v1749_v30 = vld [vmem:[%s2372_s12 + $0x198] sm:$0xff] }
 0x5b0   :  { %v391_v34 = vmul.f32 %v389_v31, %v2017_v19  ;;  %v1721_v19 = vld [vmem:[%s2372_s12 + $0xb8] sm:$0xff]  ;;  %v1731_v31 = vld [vmem:[%s2372_s12 + $0x108] sm:$0xff] }
 0x5b2   :  { %v397_v35 = vmul.f32 %v1773_v28, %v391_v34  ;;  %v1756_v28 = vld [vmem:[%s2372_s12 + $0x1d0] sm:$0xff] }
 0x5b3   :  { %v1748_v34 = vld [vmem:[%s2372_s12 + $0x190] sm:$0xff] }
 0x5b4   :  { %v403_v37 = vadd.f32 %v1774_v32, %v397_v35  ;;  %v1755_v32 = vld [vmem:[%s2372_s12 + $0x1c8] sm:$0xff]  ;;  %v1730_v35 = vld [vmem:[%s2372_s12 + $0x100] sm:$0xff] }
 0x5b6   :  { %v404_v38 = vpack.c.bf16 %v403_v37, %v402_v36  ;;  %v1754_v36 = vld [vmem:[%s2372_s12 + $0x1c0] sm:$0xff]  ;;  %v1739_v37 = vld [vmem:[%s2372_s12 + $0x148] sm:$0xff] }
 0x5b8   :  { %1414 = vmatmul.msk.bf16.vlgmr.msrb.gmra.mxu1 %vm54_vm0, %v404_v38  ;;  %1415 = vmatmul.msk.bf16.vlgmr.msrb.gmra.mxu2 %vm54_vm0, %v404_v38 }
 0x5b9   :  { %1416 = vmatmul.msk.bf16.vlgmr.msra.gmra.mxu3 %vm54_vm0, %v404_v38  ;;  %1417 = vmatmul.msk.bf16.vlgmr.msra.gmra.mxu0 %vm54_vm0, %v404_v38 }
 0x5ba   :  { %1174 = vmatpush.bf16.msrb.mxu1 %v1705_v39  ;;  %1216 = vmatpush.bf16.msra.mxu0 %v1729_v16  ;;  %v2325_v39 = vld [vmem:[%s2371_s11] sm:$0xff]  ;;  %s1849_s11 = smov [#allocation4]  }
 0x5bb   :  { %1188 = vmatpush.bf16.msrb.mxu2 %v1713_v40  ;;  %1202 = vmatpush.bf16.msra.mxu3 %v1721_v19  ;;  %v1738_v19 = vld [vmem:[%s2372_s12 + $0x140] sm:$0xff] }
 0x5be   :  { %1175 = vmatpush.bf16.msrb.mxu1 %v1704_v41  ;;  %1217 = vmatpush.bf16.msra.mxu0 %v1728_v42  ;;  %v1746_v41 = vld [vmem:[%s2372_s12 + $0x180] sm:$0xff]  ;;  %v423_v42 = vperm.slane %v2325_v39, 0 }
 0x5bf   :  { %1189 = vmatpush.bf16.msrb.mxu2 %v1712_v43  ;;  %1203 = vmatpush.bf16.msra.mxu3 %v1720_v44  ;;  %v426_v43 = vperm.slane %v2325_v39, 3 }
 0x5c2   :  { %1176 = vmatpush.bf16.msrb.mxu1 %v1703_v45  ;;  %1218 = vmatpush.bf16.msra.mxu0 %v1727_v46 }
 0x5c3   :  { %1190 = vmatpush.bf16.msrb.mxu2 %v1711_v47  ;;  %1204 = vmatpush.bf16.msra.mxu3 %v1719_v48 }
 0x5c6   :  { %1177 = vmatpush.bf16.msrb.mxu1 %v1702_v49  ;;  %1219 = vmatpush.bf16.msra.mxu0 %v1726_v50  ;;  %v424_v49 = vperm.slane %v2325_v39, 1 }
 0x5c7   :  { %1191 = vmatpush.bf16.msrb.mxu2 %v1710_v51  ;;  %1205 = vmatpush.bf16.msra.mxu3 %v1718_v52  ;;  %v425_v52 = vperm.slane %v2325_v39, 2 }
 0x5c8   :  { %1418 = vmatmul.msk.bf16.vlgmr.msra.gmra.mxu1 %vm54_vm0, %v404_v38  ;;  %1419 = vmatmul.msk.bf16.vlgmr.msra.gmra.mxu2 %vm54_vm0, %v404_v38 }
 0x5c9   :  { %1420 = vmatmul.msk.bf16.vlgmr.msrb.gmra.mxu3 %vm54_vm0, %v404_v38  ;;  %1421 = vmatmul.msk.bf16.vlgmr.msrb.gmra.mxu0 %vm54_vm0, %v404_v38  ;;  %v1747_v38 = vld [vmem:[%s2372_s12 + $0x188] sm:$0xff]  ;;  %s1309_s12 = sshll.u32 %s1849_s11, 4  ;;  %s1310_s12 = int_to_ptr.vmem [resolvable:$true] %s1309_s12 }
 0x5ca   :  { %1178 = vmatpush.bf16.msrb.mxu1 %v1701_v53  ;;  %1220 = vmatpush.bf16.msra.mxu0 %v1725_v54  ;;  %1317 = dma.vmem_to_hbm [thread:$0]  %s1310_s12, 256, %s1312_s8, [#allocation5], %s1850_s6, %s1850_s6, %s1851_s7  }
 0x5cb   :  { %1192 = vmatpush.bf16.msrb.mxu2 %v1709_v55  ;;  %1206 = vmatpush.bf16.msra.mxu3 %v1717_v56 }
 0x5ce   :  { %1179 = vmatpush.bf16.msrb.mxu1 %v1700_v57  ;;  %1221 = vmatpush.bf16.msra.mxu0 %v1724_v58 }
 0x5cf   :  { %1193 = vmatpush.bf16.msrb.mxu2 %v1708_v59  ;;  %1207 = vmatpush.bf16.msra.mxu3 %v1716_v10 }
 0x5d2   :  { %1180 = vmatpush.bf16.msrb.mxu1 %v1699_v60  ;;  %1222 = vmatpush.bf16.msra.mxu0 %v1723_v61 }
 0x5d3   :  { %1194 = vmatpush.bf16.msrb.mxu2 %v1707_v4  ;;  %1208 = vmatpush.bf16.msra.mxu3 %v1715_v5 }
 0x5d6   :  { %1181 = vmatpush.bf16.msrb.mxu1 %v1698_v62  ;;  %1223 = vmatpush.bf16.msra.mxu0 %v1722_v63 }
 0x5d7   :  { %1195 = vmatpush.bf16.msrb.mxu2 %v1706_v9  ;;  %1209 = vmatpush.bf16.msra.mxu3 %v1714_v11 }
 0x5da   :  { %1230 = vmatpush.bf16.msra.mxu1 %v1737_v1  ;;  %1272 = vmatpush.bf16.msrb.mxu0 %v1761_v3 }
 0x5db   :  { %1244 = vmatpush.bf16.msra.mxu2 %v1745_v13  ;;  %1258 = vmatpush.bf16.msrb.mxu3 %v1753_v14  ;;  %v427_v13 = vperm.slane %v2325_v39, 4 }
 0x5de   :  { %1231 = vmatpush.bf16.msra.mxu1 %v1736_v6  ;;  %1273 = vmatpush.bf16.msrb.mxu0 %v1760_v8 }
 0x5df   :  { %1245 = vmatpush.bf16.msra.mxu2 %v1744_v17  ;;  %1259 = vmatpush.bf16.msrb.mxu3 %v1752_v18 }
 0x5e2   :  { %1232 = vmatpush.bf16.msra.mxu1 %v1735_v15  ;;  %1274 = vmatpush.bf16.msrb.mxu0 %v1759_v0  ;;  %v430_v15 = vperm.slane %v2325_v39, 7 }
 0x5e3   :  { %1246 = vmatpush.bf16.msra.mxu2 %v1743_v21  ;;  %1260 = vmatpush.bf16.msrb.mxu3 %v1751_v22  ;;  %v428_v21 = vperm.slane %v2325_v39, 5 }
 0x5e6   :  { %1233 = vmatpush.bf16.msra.mxu1 %v1734_v2  ;;  %1275 = vmatpush.bf16.msrb.mxu0 %v1758_v20 }
 0x5e7   :  { %1247 = vmatpush.bf16.msra.mxu2 %v1742_v25  ;;  %1261 = vmatpush.bf16.msrb.mxu3 %v1750_v26 }
 0x5ea   :  { %1234 = vmatpush.bf16.msra.mxu1 %v1733_v23  ;;  %1276 = vmatpush.bf16.msrb.mxu0 %v1757_v24  ;;  %v429_v24 = vperm.slane %v2325_v39, 6 }
 0x5eb   :  { %1248 = vmatpush.bf16.msra.mxu2 %v1741_v29  ;;  %1262 = vmatpush.bf16.msrb.mxu3 %v1749_v30 }
 0x5ee   :  { %1235 = vmatpush.bf16.msra.mxu1 %v1732_v27  ;;  %1277 = vmatpush.bf16.msrb.mxu0 %v1756_v28 }
 0x5ef   :  { %1249 = vmatpush.bf16.msra.mxu2 %v1740_v33  ;;  %1263 = vmatpush.bf16.msrb.mxu3 %v1748_v34 }
 0x5f2   :  { %1236 = vmatpush.bf16.msra.mxu1 %v1731_v31  ;;  %1278 = vmatpush.bf16.msrb.mxu0 %v1755_v32 }
 0x5f3   :  { %1250 = vmatpush.bf16.msra.mxu2 %v1739_v37  ;;  %1264 = vmatpush.bf16.msrb.mxu3 %v1747_v38 }
 0x5f6   :  { %1237 = vmatpush.bf16.msra.mxu1 %v1730_v35  ;;  %1279 = vmatpush.bf16.msrb.mxu0 %v1754_v36 }
 0x5f7   :  { %1251 = vmatpush.bf16.msra.mxu2 %v1738_v19  ;;  %1265 = vmatpush.bf16.msrb.mxu3 %v1746_v41 }
 0x635   :  { %v531_v16 = vpop.f32.mrf.mxu1 }
 0x636   :  { %v573_v40 = vpop.f32.mrf.mxu0  ;;  %v532_v45 = vadd.f32 %v531_v16, %v423_v42 }
 0x637   :  { %v574_v47 = vadd.f32 %v573_v40, %v426_v43 }
 0x638   :  { %v634_v54 = vmax.f32 %v532_v45, 0.0 }
 0x639   :  { %v637_v56 = vmax.f32 %v574_v47, 0.0 }
 0x63b   :  { %v545_v44 = vpop.f32.mrf.mxu2 }
 0x63c   :  { %v559_v46 = vpop.f32.mrf.mxu3  ;;  %v546_v58 = vadd.f32 %v545_v44, %v424_v49 }
 0x63d   :  { %v533_v48 = vpop.f32.mrf.mxu1  ;;  %v560_v10 = vadd.f32 %v559_v46, %v425_v52 }
 0x63e   :  { %v534_v50 = vadd.f32 %v533_v48, %v423_v42  ;;  %v575_v51 = vpop.f32.mrf.mxu0  ;;  %v635_v4 = vmax.f32 %v546_v58, 0.0 }
 0x63f   :  { %v576_v53 = vadd.f32 %v575_v51, %v426_v43  ;;  %v636_v8 = vmax.f32 %v560_v10, 0.0  ;;  %v1775_v43 = vld [vmem:[%s2373_s13] ss:$0 sm:$0xff]  ;;  %s1852_s13 = smov [#allocation2]  }
 0x640   :  { %v642_v55 = vmax.f32 %v534_v50, 0.0  ;;  %s1296_s15 = sshll.u32 %s1852_s13, 4  ;;  %s1297_s15 = int_to_ptr.vmem [resolvable:$true] %s1296_s15 }
 0x641   :  { %v645_v57 = vmax.f32 %v576_v53, 0.0 }
 0x642   :  { %v650_v59 = vpack.c.bf16 %v642_v55, %v634_v54 }
 0x643   :  { %v653_v60 = vpack.c.bf16 %v645_v57, %v637_v56  ;;  %v547_v61 = vpop.f32.mrf.mxu2 }
 0x644   :  { %v548_v62 = vadd.f32 %v547_v61, %v424_v49  ;;  %v561_v63 = vpop.f32.mrf.mxu3  ;;  %1182 = vmatmul.bf16.vlgmr.msrb.gmra.mxu1 %v650_v59 }
 0x645   :  { %v562_v1 = vadd.f32 %v561_v63, %v425_v52  ;;  %1224 = vmatmul.bf16.vlgmr.msra.gmra.mxu0 %v653_v60  ;;  %v587_v3 = vpop.f32.mrf.mxu1 }
 0x646   :  { %v643_v5 = vmax.f32 %v548_v62, 0.0  ;;  %v629_v6 = vpop.f32.mrf.mxu0  ;;  %v588_v17 = vadd.f32 %v587_v3, %v427_v13 }
 0x647   :  { %v644_v9 = vmax.f32 %v562_v1, 0.0  ;;  %v630_v2 = vadd.f32 %v629_v6, %v430_v15 }
 0x648   :  { %v651_v11 = vpack.c.bf16 %v643_v5, %v635_v4  ;;  %v638_v26 = vmax.f32 %v588_v17, 0.0 }
 0x649   :  { %v652_v14 = vpack.c.bf16 %v644_v9, %v636_v8  ;;  %v641_v28 = vmax.f32 %v630_v2, 0.0 }
 0x64a   :  { %1196 = vmatmul.bf16.vlgmr.msrb.gmra.mxu2 %v651_v11 }
 0x64b   :  { %1210 = vmatmul.bf16.vlgmr.msra.gmra.mxu3 %v652_v14  ;;  %v601_v0 = vpop.f32.mrf.mxu2 }
 0x64c   :  { %v615_v18 = vpop.f32.mrf.mxu3  ;;  %v602_v30 = vadd.f32 %v601_v0, %v428_v21 }
 0x64d   :  { %v589_v20 = vpop.f32.mrf.mxu1  ;;  %v616_v32 = vadd.f32 %v615_v18, %v429_v24 }
 0x64e   :  { %v590_v22 = vadd.f32 %v589_v20, %v427_v13  ;;  %v631_v23 = vpop.f32.mrf.mxu0  ;;  %v639_v38 = vmax.f32 %v602_v30, 0.0 }
 0x64f   :  { %v632_v25 = vadd.f32 %v631_v23, %v430_v15  ;;  %v640_v40 = vmax.f32 %v616_v32, 0.0 }
 0x650   :  { %v646_v27 = vmax.f32 %v590_v22, 0.0 }
 0x651   :  { %v649_v29 = vmax.f32 %v632_v25, 0.0 }
 0x652   :  { %v654_v31 = vpack.c.bf16 %v646_v27, %v638_v26 }
 0x653   :  { %v657_v33 = vpack.c.bf16 %v649_v29, %v641_v28  ;;  %v603_v34 = vpop.f32.mrf.mxu2 }
 0x654   :  { %v604_v35 = vadd.f32 %v603_v34, %v428_v21  ;;  %v617_v36 = vpop.f32.mrf.mxu3  ;;  %1238 = vmatmul.bf16.vlgmr.msra.gmra.mxu1 %v654_v31 }
 0x655   :  { %v618_v37 = vadd.f32 %v617_v36, %v429_v24  ;;  %1280 = vmatmul.bf16.vlgmr.msrb.gmra.mxu0 %v657_v33 }
 0x656   :  { %v647_v16 = vmax.f32 %v604_v35, 0.0 }
 0x657   :  { %v648_v19 = vmax.f32 %v618_v37, 0.0 }
 0x658   :  { %v655_v39 = vpack.c.bf16 %v647_v16, %v639_v38 }
 0x659   :  { %v656_v41 = vpack.c.bf16 %v648_v19, %v640_v40 }
 0x65a   :  { %1252 = vmatmul.bf16.vlgmr.msra.gmra.mxu2 %v655_v39 }
 0x65b   :  { %1266 = vmatmul.bf16.vlgmr.msrb.gmra.mxu3 %v656_v41 }
 0x6c1   :  { %v1183_v42 = vpop.f32.mrf.mxu1 }
 0x6c2   :  { %v1225_v44 = vpop.f32.mrf.mxu0  ;;  %v1184_v46 = vadd.f32 %v1775_v43, %v1183_v42 }
 0x6c9   :  { %v1185_v48 = vpop.f32.mrf.mxu1 }
 0x6ca   :  { %v1227_v51 = vpop.f32.mrf.mxu0  ;;  %v1186_v53 = vadd.f32 %v1775_v43, %v1185_v48 }
 0x6cd   :  { %v1197_v45 = vpop.f32.mrf.mxu2 }
 0x6ce   :  { %v1211_v47 = vpop.f32.mrf.mxu3  ;;  %v1198_v49 = vadd.f32 %v1197_v45, %v1184_v46 }
 0x6d0   :  { %v1212_v50 = vadd.f32 %v1211_v47, %v1198_v49 }
 0x6d1   :  { %v1239_v57 = vpop.f32.mrf.mxu1 }
 0x6d2   :  { %v1226_v55 = vadd.f32 %v1225_v44, %v1212_v50  ;;  %v1281_v62 = vpop.f32.mrf.mxu0 }
 0x6d4   :  { %v1240_v58 = vadd.f32 %v1239_v57, %v1226_v55 }
 0x6d5   :  { %v1199_v52 = vpop.f32.mrf.mxu2 }
 0x6d6   :  { %v1213_v54 = vpop.f32.mrf.mxu3  ;;  %v1200_v56 = vadd.f32 %v1199_v52, %v1186_v53 }
 0x6d8   :  { %v1214_v59 = vadd.f32 %v1213_v54, %v1200_v56 }
 0x6d9   :  { %v1241_v4 = vpop.f32.mrf.mxu1 }
 0x6da   :  { %v1228_v63 = vadd.f32 %v1227_v51, %v1214_v59  ;;  %v1283_v14 = vpop.f32.mrf.mxu0 }
 0x6dc   :  { %v1242_v5 = vadd.f32 %v1241_v4, %v1228_v63 }
 0x6dd   :  { %v1253_v10 = vpop.f32.mrf.mxu2 }
 0x6de   :  { %v1254_v60 = vadd.f32 %v1253_v10, %v1240_v58  ;;  %v1267_v61 = vpop.f32.mrf.mxu3 }
 0x6e0   :  { %v1268_v1 = vadd.f32 %v1267_v61, %v1254_v60 }
 0x6e2   :  { %v1282_v3 = vadd.f32 %v1281_v62, %v1268_v1 }
 0x6e4   :  { %v1286_v6 = vadd.f32 %v1282_v3, %v1999_v7 }
 0x6e5   :  { %v1255_v8 = vpop.f32.mrf.mxu2 }
 0x6e6   :  { %1288 = vst.msk [vmem:[#allocation2] sm:$0xff] %vm54_vm0, %v1286_v6  ;;  %v1256_v9 = vadd.f32 %v1255_v8, %v1242_v5  ;;  %v1269_v11 = vpop.f32.mrf.mxu3 }
 0x6e8   :  { %v1270_v13 = vadd.f32 %v1269_v11, %v1256_v9 }
 0x6ea   :  { %v1284_v15 = vadd.f32 %v1283_v14, %v1270_v13 }
 0x6ec   :  { %v1287_v0 = vadd.f32 %v1284_v15, %v2004_v12 }
 0x6ee   :  { %1289 = vst.msk [vmem:[#allocation2 + $0x8] sm:$0xff] %vm54_vm0, %v1287_v0 }
 0x6ef   :  { %1304 = dma.vmem_to_hbm [thread:$0]  %s1297_s15, 256, %s1299_s22, [#allocation3], %s1850_s6, %s1850_s6, %s1851_s7  }
 0x6f0   :  { %1842 = dma.done.wait [#allocation3], 256  }
 0x6f1   :  { %1843 = vsyncadd [#allocation3], 4294967040 }
 0x6f2   :  { %1844 = dma.done.wait [#allocation5], 256  }
 0x6f3   :  { %1845 = vsyncadd [#allocation5], 4294967040 }
 0x6f4   :  { %1326 = vsyncpa [#allocation3], 1 }
 0x6f5   :  { %1327 = vsyncpa [#allocation5], 1 }

</bundles_post_ra>
